<compile_context>
chip_gen: v6e
topology: v6e:2x2x1
jax: 0.10.0
libtpu: 0.0.40
codegen_flags: <defaults>
</compile_context>

<pallas_src>
import jax
import jax.numpy as jnp
from jax.experimental import pallas as pl
from jax.experimental.pallas import tpu as pltpu


def _round_up(x: int, m: int) -> int:
    return ((x + m - 1) // m) * m


def _vmem_budget_bytes() -> int:
    """Conservative per-core VMEM budget (generation-aware when queryable)."""
    cap = 64 * 1024 * 1024  # assume v7x (smallest per-core VMEM) if unqueryable
    try:
        cap = int(pltpu.get_tpu_info().vmem_capacity_bytes)
    except Exception:
        pass
    return max(16 * 1024 * 1024, cap // 2)


# ---------------------------------------------------------------------------
# Main path: resident bf16 (hi, lo) table + batched in-kernel gather (one-hot
# MXU matmul) fused with the softmax. Output tile is lane-dense (k, TB).
# ---------------------------------------------------------------------------
def _gather_softmax_kernel(hi_ref, lo_ref, uid_ref, out_ref):
    # hi_ref/lo_ref: (kp, num) bf16 split of the transposed table; fully
    #                resident in VMEM (copied in once, not double-buffered).
    # uid_ref      : (1, TB) int32 tile of (clamped) row ids.
    # out_ref      : (k, TB) lane-dense softmax output tile (transposed).
    _, num = hi_ref.shape
    k, tb = out_ref.shape

    uid = uid_ref[0, :]                                          # (TB,) int32

    # Exact one-hot in bf16 (0/1 representable exactly): (num, TB).
    row_ids = jax.lax.broadcasted_iota(jnp.int32, (num, tb), 0)
    onehot = (row_ids == uid[None, :]).astype(jnp.bfloat16)

    # Batched row gather as two native-bf16 MXU passes. hi + lo reproduces the
    # f32 table to ~16 mantissa bits, and the one-hot selects exactly one
    # element per column, so the gather matches a direct row read to ~1e-5 rel.
    g = (jnp.dot(hi_ref[...], onehot, preferred_element_type=jnp.float32)
         + jnp.dot(lo_ref[...], onehot, preferred_element_type=jnp.float32))[:k, :]

    # Softmax over k (axis 0 of the transposed tile); arithmetic kept in f32
    # (v5e has no bf16 VPU/EUP path). Denominator via EUP approx reciprocal.
    m = jnp.max(g, axis=0, keepdims=True)
    e = jnp.exp(g - m)
    s = jnp.sum(e, axis=0, keepdims=True)
    out_ref[...] = (e * pl.reciprocal(s, approx=True)).astype(out_ref.dtype)


def _forward_resident(matrix, uid, tb, vmem_limit):
    num, k = matrix.shape
    (batch,) = uid.shape
    kp = _round_up(k, 8)                 # pad sublanes for a clean MXU lhs
    b_pad = _round_up(batch, tb)

    # One-time (outside the grid loop) f32 -> bf16 hi/lo split of the
    # transposed, sublane-padded table. For bf16/f16 tables lo is exactly 0,
    # so this path is correct for any float table dtype.
    mat_t = jnp.pad(matrix.T.astype(jnp.float32), ((0, kp - k), (0, 0)))
    hi = mat_t.astype(jnp.bfloat16)
    lo = (mat_t - hi.astype(jnp.float32)).astype(jnp.bfloat16)
    uid2d = jnp.pad(uid, (0, b_pad - batch)).reshape(1, b_pad)   # (1, b_pad)

    out_t = pl.pallas_call(
        _gather_softmax_kernel,
        out_shape=jax.ShapeDtypeStruct((k, b_pad), matrix.dtype),
        grid=(b_pad // tb,),
        in_specs=[
            # Whole-array VMEM residency: one copy, no pipeline double-buffer.
            pl.BlockSpec(memory_space=pltpu.MemorySpace.VMEM),
            pl.BlockSpec(memory_space=pltpu.MemorySpace.VMEM),
            pl.BlockSpec((1, tb), lambda i: (0, i)),
        ],
        out_specs=pl.BlockSpec((k, tb), lambda i: (0, i)),
        compiler_params=pltpu.CompilerParams(
            dimension_semantics=("parallel",),       # independent batch tiles
            vmem_limit_bytes=int(vmem_limit),
        ),
    )(hi, lo, uid2d)

    # Layout plumbing back to (B, k) outside the kernel (stores stay dense).
    return out_t[:, :batch].T


# ---------------------------------------------------------------------------
# Fallback for tables too large to keep resident in VMEM: batched manual-DMA
# row gather. uid is scalar-prefetched to SMEM; each grid step issues TBF row
# copies from HBM into a double-buffered VMEM scratch (the next tile's copies
# are issued before waiting on the current tile), then does the softmax on the
# whole (TBF, k) tile. Replaces the old per-row grid (one step + one 8-byte
# DMA + one masked (1, k) store per uid).
# ---------------------------------------------------------------------------
def _make_hbm_gather_softmax_kernel(tbf):
    def kernel(uid_ref, mat_hbm, out_ref, buf, sem):
        # uid_ref: (b_pad,) int32 row ids in SMEM (scalar prefetch)
        # mat_hbm: (num, k) table left in HBM
        # out_ref: (TBF, k) output tile
        # buf    : (2, TBF, k) double-buffered VMEM landing zone
        # sem    : (2,) DMA semaphores, one per slot
        i = pl.program_id(0)
        n = pl.num_programs(0)

        def issue(tile, slot):
            base = tile * tbf

            @pl.loop(0, tbf)
            def _(j):
                pltpu.make_async_copy(
                    mat_hbm.at[uid_ref[base + j]],
                    buf.at[slot, j],
                    sem.at[slot],
                ).start()

        @pl.when(i == 0)
        def _():
            issue(0, 0)                         # prologue: prime slot 0

        slot = i % 2

        @pl.when(i + 1 < n)
        def _():
            issue(i + 1, 1 - slot)              # prefetch next tile

        # Wait for this tile's TBF row copies (one wait per issued copy).
        @pl.loop(0, tbf)
        def _(j):
            pltpu.make_async_copy(
                mat_hbm.at[0], buf.at[slot, j], sem.at[slot]).wait()

        # Softmax over k on the gathered tile (f32 arithmetic).
        # Note: last dim k << 128 makes this a masked store, but the gather
        # DMAs dominate this path; the resident path keeps lane-dense stores.
        x = buf[slot].astype(jnp.float32)                       # (TBF, k)
        m = jnp.max(x, axis=-1, keepdims=True)
        e = jnp.exp(x - m)
        s = jnp.sum(e, axis=-1, keepdims=True)
        out_ref[...] = (e * pl.reciprocal(s, approx=True)).astype(out_ref.dtype)

    return kernel


def _forward_gather_hbm(matrix, uid, tbf=256):
    num, k = matrix.shape
    (batch,) = uid.shape
    b_pad = _round_up(batch, tbf)
    uid_p = jnp.pad(uid, (0, b_pad - batch))     # padded ids hit row 0 (valid)

    grid_spec = pltpu.PrefetchScalarGridSpec(
        num_scalar_prefetch=1,
        grid=(b_pad // tbf,),
        in_specs=[pl.BlockSpec(memory_space=pl.ANY)],          # table in HBM
        out_specs=pl.BlockSpec((tbf, k), lambda i, uid_ref: (i, 0)),
        scratch_shapes=[
            pltpu.VMEM((2, tbf, k), matrix.dtype),
            pltpu.SemaphoreType.DMA((2,)),
        ],
    )
    out = pl.pallas_call(
        _make_hbm_gather_softmax_kernel(tbf),
        out_shape=jax.ShapeDtypeStruct((b_pad, k), matrix.dtype),
        grid_spec=grid_spec,
        compiler_params=pltpu.CompilerParams(
            # Slot/prefetch state carries across grid steps -> sequential.
            dimension_semantics=("arbitrary",)),
    )(uid_p, matrix)
    return out[:batch]


def learnable_matrix_forward(matrix: jax.Array, uid: jax.Array) -> jax.Array:
    """Pallas equivalent of LearnableMatrix.forward: softmax(matrix[uid], dim=1).

    Note: for tiny B*k (like the smoke test below) plain
    jax.nn.softmax(matrix[uid]) would beat any kernel; the Pallas path is kept
    unconditional here so the kernel itself is exercised.
    """
    num, k = matrix.shape
    (batch,) = uid.shape
    # Guard OOB row ids (PyTorch indexing would raise; we clamp instead).
    uid = jnp.clip(uid.astype(jnp.int32), 0, num - 1)

    vmem_budget = _vmem_budget_bytes()

    # Lane-dense batch tile, generation-aware: the per-step bf16 one-hot
    # (num x tb) must stay well inside the local VMEM budget.
    tb = 1024
    while tb > 128 and num * tb * 2 > vmem_budget // 4:
        tb //= 2
    tb = max(128, min(tb, _round_up(batch, 128)))

    kp = _round_up(k, 8)
    out_isz = jnp.dtype(matrix.dtype).itemsize
    est_vmem = (
        kp * num * 4                        # resident bf16 hi+lo tables (1 copy each)
        + num * tb * 2                      # bf16 one-hot intermediate per step
        + 2 * (tb * 4 + k * tb * out_isz)   # double-buffered uid / output tiles
        + (2 << 20)                         # headroom for compiler temporaries
    )

    if est_vmem > vmem_budget:
        return _forward_gather_hbm(matrix, uid)
    return _forward_resident(matrix, uid, tb, vmem_budget)


if __name__ == "__main__":
    # Deterministic parameter init (mirrors nn.Parameter(torch.randn(num, k))).
    num, k_dim, batch = 16, 2, 8
    key = jax.random.PRNGKey(0)
    k_mat, k_uid = jax.random.split(key)
    matrix = jax.random.normal(k_mat, (num, k_dim), dtype=jnp.float32)
    uid = jax.random.randint(k_uid, (batch,), 0, num, dtype=jnp.int32)

    out = learnable_matrix_forward(matrix, uid)
    out = jax.block_until_ready(out)

    # Reference check in plain JAX (tolerance covers the approx reciprocal and
    # the ~1e-5 relative error of the 2-term bf16 gather split).
    ref = jax.nn.softmax(matrix[uid], axis=1)
    assert out.shape == (batch, k_dim)
    assert jnp.allclose(out, ref, atol=2e-3, rtol=2e-3), float(
        jnp.max(jnp.abs(out - ref)))

    print("KERNEL_OK")
</pallas_src>

<mosaic_0001>
module attributes {stable_mosaic.version = 11 : i64} {
  func.func @_gather_softmax_kernel(%arg0: i32, %arg1: memref<8x16xbf16, #tpu.memory_space<vmem>>, %arg2: memref<8x16xbf16, #tpu.memory_space<vmem>>, %arg3: memref<1x128xi32, #tpu.memory_space<vmem>>, %arg4: memref<2x128xf32, #tpu.memory_space<vmem>>) attributes {dimension_semantics = [#tpu.dimension_semantics<parallel>], iteration_bounds = array<i64: 1>, scalar_prefetch = 0 : i64, scratch_operands = 0 : i64, tpu.core_type = #tpu.core_type<tc>, window_params = [{pipeline_mode = #tpu.pipeline_mode<synchronous>, transform_indices = @transform_0, window_bounds = array<i64: 8, 16>}, {pipeline_mode = #tpu.pipeline_mode<synchronous>, transform_indices = @transform_1, window_bounds = array<i64: 8, 16>}, {transform_indices = @transform_2, window_bounds = array<i64: 1, 128>}, {transform_indices = @transform_3, window_bounds = array<i64: 2, 128>}]} {
    %c0 = arith.constant 0 : index
    %c0_0 = arith.constant 0 : index
    %0 = vector.load %arg3[%c0, %c0_0] : memref<1x128xi32, #tpu.memory_space<vmem>>, vector<1x128xi32>
    %1 = vector.shape_cast %0 : vector<1x128xi32> to vector<128xi32>
    %2 = tpu.iota {dimensions = array<i32: 0>} : vector<16x128xi32>
    %3 = vector.shape_cast %1 : vector<128xi32> to vector<1x128xi32>
    %4 = vector.broadcast %3 : vector<1x128xi32> to vector<16x128xi32>
    %5 = arith.cmpi eq, %2, %4 : vector<16x128xi32>
    %6 = arith.extui %5 : vector<16x128xi1> to vector<16x128xi32>
    %7 = arith.sitofp %6 : vector<16x128xi32> to vector<16x128xf32>
    %8 = arith.truncf %7 : vector<16x128xf32> to vector<16x128xbf16>
    %c0_1 = arith.constant 0 : index
    %c0_2 = arith.constant 0 : index
    %9 = vector.load %arg1[%c0_1, %c0_2] : memref<8x16xbf16, #tpu.memory_space<vmem>>, vector<8x16xbf16>
    %cst = arith.constant dense<0.000000e+00> : vector<8x128xf32>
    %10 = tpu.matmul %9, %8, %cst {dimension_numbers = #tpu.dot_dimension_numbers<[1], [0], [0], [1], [0, 0, 1, 1], [], []>} : vector<8x16xbf16>, vector<16x128xbf16>, vector<8x128xf32> -> vector<8x128xf32>
    %c0_3 = arith.constant 0 : index
    %c0_4 = arith.constant 0 : index
    %11 = vector.load %arg2[%c0_3, %c0_4] : memref<8x16xbf16, #tpu.memory_space<vmem>>, vector<8x16xbf16>
    %cst_5 = arith.constant dense<0.000000e+00> : vector<8x128xf32>
    %12 = tpu.matmul %11, %8, %cst_5 {dimension_numbers = #tpu.dot_dimension_numbers<[1], [0], [0], [1], [0, 0, 1, 1], [], []>} : vector<8x16xbf16>, vector<16x128xbf16>, vector<8x128xf32> -> vector<8x128xf32>
    %13 = arith.addf %10, %12 : vector<8x128xf32>
    %14 = vector.extract_strided_slice %13 {offsets = [0, 0], sizes = [2, 128], strides = [1, 1]} : vector<8x128xf32> to vector<2x128xf32>
    %cst_6 = arith.constant dense<0xFF800000> : vector<128xf32>
    %15 = vector.multi_reduction <maximumf>, %14, %cst_6 [0] : vector<2x128xf32> to vector<128xf32>
    %16 = vector.shape_cast %15 : vector<128xf32> to vector<1x128xf32>
    %17 = vector.broadcast %16 : vector<1x128xf32> to vector<2x128xf32>
    %18 = arith.subf %14, %17 : vector<2x128xf32>
    %19 = math.exp %18 : vector<2x128xf32>
    %cst_7 = arith.constant dense<0.000000e+00> : vector<128xf32>
    %20 = vector.multi_reduction <add>, %19, %cst_7 [0] : vector<2x128xf32> to vector<128xf32>
    %21 = vector.shape_cast %20 : vector<128xf32> to vector<1x128xf32>
    %22 = tpu.reciprocal %21 {approx = true} : vector<1x128xf32> -> vector<1x128xf32>
    %23 = vector.broadcast %22 : vector<1x128xf32> to vector<2x128xf32>
    %24 = arith.mulf %19, %23 : vector<2x128xf32>
    %c0_8 = arith.constant 0 : index
    %c0_9 = arith.constant 0 : index
    %25 = vector.load %arg4[%c0_8, %c0_9] : memref<2x128xf32, #tpu.memory_space<vmem>>, vector<2x128xf32>
    tpu.vector_store %arg4[%c0_8, %c0_9], %24 {strides = array<i32>} : memref<2x128xf32, #tpu.memory_space<vmem>>, vector<2x128xf32>,
    return
  }
  func.func @transform_0(%arg0: i32) -> (i32, i32) {
    %c0_i32 = arith.constant 0 : i32
    %c0_i32_0 = arith.constant 0 : i32
    %c0_i32_1 = arith.constant 0 : i32
    return %c0_i32, %c0_i32_0 : i32, i32
  }
  func.func @transform_1(%arg0: i32) -> (i32, i32) {
    %c0_i32 = arith.constant 0 : i32
    %c0_i32_0 = arith.constant 0 : i32
    %c0_i32_1 = arith.constant 0 : i32
    return %c0_i32, %c0_i32_0 : i32, i32
  }
  func.func @transform_2(%arg0: i32) -> (i32, i32) {
    %c0_i32 = arith.constant 0 : i32
    %c0_i32_0 = arith.constant 0 : i32
    return %c0_i32, %arg0 : i32, i32
  }
  func.func @transform_3(%arg0: i32) -> (i32, i32) {
    %c0_i32 = arith.constant 0 : i32
    %c0_i32_0 = arith.constant 0 : i32
    return %c0_i32, %arg0 : i32, i32
  }
}

</mosaic_0001>

<bundles_post_ra>
// kernel: tpu_custom_call.1
= control target key start
LH: loop header
LB: loop body
LE: loop exit
PB: predicated region body
PF: predicated region fallthrough
CT: control target
= control target key end

     0   :  { %8 = vsyncpa [#allocation3], 0  ;;  %s322_s0 = inlined_call_operand.hbm [shape: bf16[8,16], index: 0, kind: input, shape index: {}]   ;;  %s323_s1 = inlined_call_operand.hbm [shape: bf16[8,16], index: 1, kind: input, shape index: {}]   ;;  %s324_s2 = inlined_call_operand.vmem [shape: s32[1,128], index: 2, kind: input, shape index: {}]   ;;  %s325_s3 = inlined_call_operand.hbm [shape: f32[2,128], index: 3, kind: output, shape index: {}]  }
   0x1   :  { %9 = vsyncpa [#allocation6], 0 }
   0x2   :  { %10 = vsyncpa [#allocation4], 0  ;;  %s282_s12 = smov [#allocation2]   ;;  %s283_s14 = smov [#allocation5]  }
   0x3   :  { %s17_s13 = sshll.u32 %s282_s12, 4  ;;  %s27_s15 = sshll.u32 %s283_s14, 4  ;;  %s18_s13 = int_to_ptr.vmem [resolvable:$true] %s17_s13  ;;  %s28_s15 = int_to_ptr.vmem [resolvable:$true] %s27_s15 }
   0x4   :  { %s224_s16 = scalar_lea.vmem %s18_s13, 64  ;;  %p229_p1 = scmp.lt.s32.totalorder %s18_s13, %s18_s13 }
   0x5   :  { %p225_p0 = scmp.ne.s32.totalorder %s18_s13, %s224_s16  ;;  %p230_p2 = scmp.lt.s32.totalorder %s224_s16, %s224_s16 }
   0x7   :  { %p231_p3 = por %p230_p2, %p229_p1 }
   0x9   :  { %p232_p4 = pnand %p231_p3, %p225_p0 }
   0xb   :  { %235 = shalt.err (!%p232_p4)
}
   0xc   :  { %20 = dma.hbm_to_vmem [thread:$0]  %s322_s0, 64, %s18_s13, [#allocation3]  }
   0xd   :  { %s244_s19 = scalar_lea.vmem %s28_s15, 64  ;;  %p249_p6 = scmp.lt.s32.totalorder %s28_s15, %s28_s15 }
   0xe   :  { %p245_p5 = scmp.ne.s32.totalorder %s28_s15, %s244_s19  ;;  %p250_p7 = scmp.lt.s32.totalorder %s244_s19, %s244_s19 }
  0x10   :  { %p251_p8 = por %p250_p7, %p249_p6 }
  0x12   :  { %p252_p9 = pnand %p251_p8, %p245_p5 }
  0x14   :  { %255 = shalt.err (!%p252_p9)
}
  0x15   :  { %30 = dma.hbm_to_vmem [thread:$0]  %s323_s1, 64, %s28_s15, [#allocation6]  }
  0x16   :  { %276 = dma.done.wait [#allocation3], 64  }
  0x17   :  { %277 = vsyncadd [#allocation3], 4294967232 }
  0x18   :  { %278 = dma.done.wait [#allocation6], 64  }
  0x19   :  { %279 = vsyncadd [#allocation6], 4294967232  ;;  %v41_v0 = vlaneseq  ;;  %v284_v1 = vmov 0.0   ;;  %vm285_vm0 = vmmov 0   ;;  %v181_v4 = vld [vmem:[%s324_s2] ss:$0 sm:$0xff] }
  0x1a   :  { %194 = vmatprep.subr.bf16.mxu0 %v284_v1  ;;  %200 = vmatprep.subr.bf16.mxu1 %v284_v1  ;;  %v286_v5 = vmov 1.0|1.0   ;;  %v56_v6 = vld [vmem:[#allocation5] sm:$0xf]  ;;  %vm57_vm4 = vcmask 130048   ;;  %vm144_vm5 = vcmask 1041408  }
  0x1b   :  { %v42_v2 = vshrl.u32 %v41_v0, 7  ;;  %196 = vmatprep.mubr.msk.bf16.mxu0 %vm285_vm0, %v284_v1  ;;  %202 = vmatprep.mubr.msk.bf16.mxu1 %vm285_vm0, %v284_v1  ;;  %v55_v7 = vld [vmem:[#allocation2] sm:$0xf]  ;;  %s287_s1 = smov [#allocation7]  }
  0x1c   :  { %s171_s2 = sshll.u32 %s287_s1, 4  ;;  %s172_s2 = int_to_ptr.vmem [resolvable:$true] %s171_s2 }
  0x1d   :  { %v43_v3 = vadd.s32 8, %v42_v2  ;;  %vm48_vm1 = vcmp.eq.s32.totalorder %v42_v2, %v181_v4  ;;  %s256_s23 = scalar_lea.vmem %s172_s2, 32  ;;  %p261_p11 = scmp.lt.s32.totalorder %s172_s2, %s172_s2 }
  0x1e   :  { %p257_p10 = scmp.ne.s32.totalorder %s172_s2, %s256_s23  ;;  %p262_p12 = scmp.lt.s32.totalorder %s256_s23, %s256_s23 }
  0x1f   :  { %vm49_vm2 = vcmp.eq.s32.totalorder %v43_v3, %v181_v4 }
  0x20   :  { %vm184_vm3 = vmpackc.low %vm49_vm2, %vm48_vm1  ;;  %p263_p13 = por %p262_p12, %p261_p11 }
  0x21   :  { %195 = vmatpush3.bf16.msk.msra.mxu0 %vm184_vm3, %v286_v5  ;;  %201 = vmatpush3.bf16.msk.msra.mxu1 %vm184_vm3, %v286_v5 }
  0x22   :  { %p264_p0 = pnand %p263_p13, %p257_p10 }
  0x24   :  { %197 = vmatmul.mubr.msk.bf16.vlgmr.msra.gmra.mxu0 %vm57_vm4, %v56_v6  ;;  %203 = vmatmul.mubr.msk.bf16.vlgmr.msra.gmra.mxu1 %vm57_vm4, %v55_v7 }
  0xe4   :  { %v95_v8 = vpop.f32.mrf.mxu0  ;;  %v138_v9 = vpop.f32.mrf.mxu1 }
  0xe5   :  { %v139_v10 = vadd.f32 %v138_v9, %v95_v8 }
  0xe6   :  { %v198_v11 = vpop.f32.mrf.mxu0  ;;  %v204_v12 = vpop.f32.mrf.mxu1 }
  0xe7   :  { %v145_v13 = vsel %vm144_vm5, %v139_v10, -inf }
  0xe8   :  { %v146_v14 = vrot.slane %v145_v13, 4  ;;  %v98_v15 = vpop.f32.mrf.mxu0  ;;  %v141_v16 = vpop.f32.mrf.mxu1 }
  0xea   :  { %v147_v17 = vmax.f32 %v145_v13, %v146_v14  ;;  %v199_v18 = vpop.f32.mrf.mxu0  ;;  %v205_v19 = vpop.f32.mrf.mxu1 }
  0xec   :  { %v148_v20 = vrot.slane %v147_v17, 2 }
  0xee   :  { %v149_v21 = vmax.f32 %v147_v17, %v148_v20 }
  0xf0   :  { %v150_v22 = vrot.slane %v149_v21, 1 }
  0xf2   :  { %v151_v23 = vmax.f32 %v149_v21, %v150_v22 }
  0xf4   :  { %v152_v24 = vsub.f32 %v139_v10, %v151_v23 }
  0xf6   :  { %v153_v25 = vmul.f32 1.442695, %v152_v24 }
  0xf8   :  { %212 = vpow2.f32 %v153_v25 }
 0x105   :  { %v213_v26 = vpop.eup %212 }
 0x106   :  { %v155_v27 = vsel %vm144_vm5, %v213_v26, 0.0 }
 0x107   :  { %v156_v28 = vrot.slane %v155_v27, 4 }
 0x109   :  { %v157_v29 = vadd.f32 %v156_v28, %v155_v27 }
 0x10b   :  { %v158_v30 = vrot.slane %v157_v29, 2 }
 0x10d   :  { %v159_v31 = vadd.f32 %v158_v30, %v157_v29 }
 0x10f   :  { %v160_v32 = vrot.slane %v159_v31, 1 }
 0x111   :  { %v161_v33 = vadd.f32 %v160_v32, %v159_v31 }
 0x113   :  { %214 = vrcp.f32 %v161_v33 }
 0x120   :  { %v215_v34 = vpop.eup %214 }
 0x121   :  { %v163_v35 = vmul.f32 %v215_v34, %v213_v26 }
 0x123   :  { %164 = vst [vmem:[#allocation7] sm:$0x3] %v163_v35 }
 0x124   :  { %267 = shalt.err (!%p264_p0)
}
 0x125   :  { %174 = dma.vmem_to_hbm [thread:$0]  %s172_s2, 32, %s325_s3, [#allocation4]  }
 0x126   :  { %280 = dma.done.wait [#allocation4], 32  }
 0x127   :  { %281 = vsyncadd [#allocation4], 4294967264 }
 0x128   :  { %178 = vsyncpa [#allocation3], 1 }
 0x129   :  { %179 = vsyncpa [#allocation6], 1 }
 0x12a   :  { %180 = vsyncpa [#allocation4], 1 }

</bundles_post_ra>
